<compile_context>
chip_gen: v7x
topology: tpu7x:2x2x1
jax: 0.10.0
libtpu: 0.0.40
codegen_flags: <defaults>
</compile_context>

<pallas_src>
import jax
import jax.numpy as jnp
from jax.experimental import pallas as pl
from jax.experimental.pallas import tpu as pltpu


# ----------------------------------------------------------------------------
# Fused Pallas kernel: o = log_softmax(relu(x @ w + b), axis=-1)
# (dropout = identity in eval mode; the second ReLU is a no-op after the first
#  ReLU + identity dropout, so it is folded away.)
# ----------------------------------------------------------------------------
def fcnet_kernel(x_ref, w_ref, b_ref, o_ref):
    # x: [TM, 784]  w: [784, 20]  b: [1, 20]  o: [TM, 20]
    h = jnp.dot(x_ref[...], w_ref[...], preferred_element_type=jnp.float32)
    h = jnp.maximum(h + b_ref[...], 0.0)          # fc1 + ReLU (dropout: identity)
    # log_softmax over the feature axis, max-stabilized (exp/log run on the EUP).
    m = jnp.max(h, axis=-1, keepdims=True)
    lse = m + jnp.log(jnp.sum(jnp.exp(h - m), axis=-1, keepdims=True))
    o_ref[...] = h - lse


# ----------------------------------------------------------------------------
# Wrapper
# ----------------------------------------------------------------------------
def _round_up(n, m):
    return ((n + m - 1) // m) * m


def fcnet_forward(x, params, *, max_tile_m=512):
    """x: [N, ...] with prod(...) == 784 (e.g. [N, 1, 28, 28]). Returns [N, 20]."""
    N = x.shape[0]
    x2 = x.reshape(N, -1).astype(jnp.float32)          # torch.flatten(x, 1)
    K = x2.shape[1]

    w = params["fc1_w"].T.astype(jnp.float32)          # [784, 20]
    b = params["fc1_b"][None, :].astype(jnp.float32)   # [1, 20]
    F_out = w.shape[1]

    # Batch tile: multiple of 8 sublanes, capped so VMEM stays small even on v7x.
    tm = min(max_tile_m, _round_up(N, 8))
    Np = _round_up(N, tm)
    if Np != N:
        x2 = jnp.pad(x2, ((0, Np - N), (0, 0)))        # zero rows are discarded below

    out = pl.pallas_call(
        fcnet_kernel,
        out_shape=jax.ShapeDtypeStruct((Np, F_out), jnp.float32),
        grid=(Np // tm,),
        in_specs=[
            pl.BlockSpec((tm, K), lambda i: (i, 0)),      # x tile, pipelined over batch
            pl.BlockSpec((K, F_out), lambda i: (0, 0)),   # fc1 weight, resident
            pl.BlockSpec((1, F_out), lambda i: (0, 0)),   # fc1 bias, resident
        ],
        out_specs=pl.BlockSpec((tm, F_out), lambda i: (i, 0)),
        compiler_params=pltpu.CompilerParams(
            dimension_semantics=("parallel",),            # megacore sharding on v7x
            vmem_limit_bytes=64 * 1024 * 1024,
        ),
    )(x2, w, b)
    return out[:N]


# ----------------------------------------------------------------------------
# Parameter init (mirrors the PyTorch module: fc2 exists but is unused in forward)
# ----------------------------------------------------------------------------
def init_params(key):
    ks = jax.random.split(key, 4)
    return {
        "fc1_w": 0.05 * jax.random.normal(ks[0], (20, 784), jnp.float32),
        "fc1_b": 0.05 * jax.random.normal(ks[1], (20,), jnp.float32),
        "fc2_w": 0.05 * jax.random.normal(ks[2], (10, 20), jnp.float32),   # unused
        "fc2_b": 0.05 * jax.random.normal(ks[3], (10,), jnp.float32),      # unused
    }


# ----------------------------------------------------------------------------
# Plain-JAX reference (matches the PyTorch forward, eval mode)
# ----------------------------------------------------------------------------
def reference_forward(x, p):
    xf = x.reshape(x.shape[0], -1).astype(jnp.float32)
    h = jnp.maximum(xf @ p["fc1_w"].T + p["fc1_b"], 0.0)   # fc1 + relu
    h = jnp.maximum(h, 0.0)                                 # dropout(eval) + relu
    return jax.nn.log_softmax(h, axis=1)


if __name__ == "__main__":
    key = jax.random.PRNGKey(0)
    kx, kp = jax.random.split(key)

    # fc1 expects 784 = 1*28*28 input features (MNIST-style); small batch of 2.
    x = jax.random.normal(kx, (2, 1, 28, 28), jnp.float32)
    params = init_params(kp)

    out = fcnet_forward(x, params)
    out = jax.block_until_ready(out)

    ref = reference_forward(x, params)
    assert out.shape == (2, 20), out.shape
    assert jnp.all(jnp.isfinite(out))
    assert jnp.allclose(out, ref, atol=1e-5, rtol=1e-5), \
        f"max abs diff {jnp.max(jnp.abs(out - ref))}"

    print("KERNEL_OK")
</pallas_src>

<mosaic_0001>
module attributes {stable_mosaic.version = 11 : i64} {
  func.func @fcnet_kernel(%arg0: i32, %arg1: memref<8x784xf32, #tpu.memory_space<vmem>>, %arg2: memref<784x20xf32, #tpu.memory_space<vmem>>, %arg3: memref<1x20xf32, #tpu.memory_space<vmem>>, %arg4: memref<8x20xf32, #tpu.memory_space<vmem>>) attributes {dimension_semantics = [#tpu.dimension_semantics<parallel>], iteration_bounds = array<i64: 1>, scalar_prefetch = 0 : i64, scratch_operands = 0 : i64, tpu.core_type = #tpu.core_type<tc>, window_params = [{transform_indices = @transform_0, window_bounds = array<i64: 8, 784>}, {pipeline_mode = #tpu.pipeline_mode<synchronous>, transform_indices = @transform_1, window_bounds = array<i64: 784, 20>}, {pipeline_mode = #tpu.pipeline_mode<synchronous>, transform_indices = @transform_2, window_bounds = array<i64: 1, 20>}, {transform_indices = @transform_3, window_bounds = array<i64: 8, 20>}]} {
    %c0 = arith.constant 0 : index
    %c0_0 = arith.constant 0 : index
    %0 = vector.load %arg1[%c0, %c0_0] : memref<8x784xf32, #tpu.memory_space<vmem>>, vector<8x784xf32>
    %c0_1 = arith.constant 0 : index
    %c0_2 = arith.constant 0 : index
    %1 = vector.load %arg2[%c0_1, %c0_2] : memref<784x20xf32, #tpu.memory_space<vmem>>, vector<784x20xf32>
    %cst = arith.constant dense<0.000000e+00> : vector<8x20xf32>
    %2 = tpu.matmul %0, %1, %cst {dimension_numbers = #tpu.dot_dimension_numbers<[1], [0], [0], [1], [0, 0, 1, 1], [], []>} : vector<8x784xf32>, vector<784x20xf32>, vector<8x20xf32> -> vector<8x20xf32>
    %c0_3 = arith.constant 0 : index
    %c0_4 = arith.constant 0 : index
    %3 = vector.load %arg3[%c0_3, %c0_4] : memref<1x20xf32, #tpu.memory_space<vmem>>, vector<1x20xf32>
    %4 = vector.broadcast %3 : vector<1x20xf32> to vector<8x20xf32>
    %5 = arith.addf %2, %4 : vector<8x20xf32>
    %cst_5 = arith.constant 0.000000e+00 : f32
    %6 = vector.broadcast %cst_5 : f32 to vector<8x20xf32>
    %7 = arith.maximumf %5, %6 : vector<8x20xf32>
    %cst_6 = arith.constant dense<0xFF800000> : vector<8xf32>
    %8 = vector.multi_reduction <maximumf>, %7, %cst_6 [1] : vector<8x20xf32> to vector<8xf32>
    %9 = vector.shape_cast %8 : vector<8xf32> to vector<8x1xf32>
    %10 = vector.broadcast %9 : vector<8x1xf32> to vector<8x20xf32>
    %11 = arith.subf %7, %10 : vector<8x20xf32>
    %12 = math.exp %11 : vector<8x20xf32>
    %cst_7 = arith.constant dense<0.000000e+00> : vector<8xf32>
    %13 = vector.multi_reduction <add>, %12, %cst_7 [1] : vector<8x20xf32> to vector<8xf32>
    %14 = vector.shape_cast %13 : vector<8xf32> to vector<8x1xf32>
    %15 = math.log %14 : vector<8x1xf32>
    %16 = arith.addf %9, %15 : vector<8x1xf32>
    %17 = vector.broadcast %16 : vector<8x1xf32> to vector<8x20xf32>
    %18 = arith.subf %7, %17 : vector<8x20xf32>
    %c0_8 = arith.constant 0 : index
    %c0_9 = arith.constant 0 : index
    %19 = vector.load %arg4[%c0_8, %c0_9] : memref<8x20xf32, #tpu.memory_space<vmem>>, vector<8x20xf32>
    tpu.vector_store %arg4[%c0_8, %c0_9], %18 {strides = array<i32>} : memref<8x20xf32, #tpu.memory_space<vmem>>, vector<8x20xf32>,
    return
  }
  func.func @transform_0(%arg0: i32) -> (i32, i32) {
    %c0_i32 = arith.constant 0 : i32
    %c0_i32_0 = arith.constant 0 : i32
    return %arg0, %c0_i32 : i32, i32
  }
  func.func @transform_1(%arg0: i32) -> (i32, i32) {
    %c0_i32 = arith.constant 0 : i32
    %c0_i32_0 = arith.constant 0 : i32
    %c0_i32_1 = arith.constant 0 : i32
    return %c0_i32, %c0_i32_0 : i32, i32
  }
  func.func @transform_2(%arg0: i32) -> (i32, i32) {
    %c0_i32 = arith.constant 0 : i32
    %c0_i32_0 = arith.constant 0 : i32
    %c0_i32_1 = arith.constant 0 : i32
    return %c0_i32, %c0_i32_0 : i32, i32
  }
  func.func @transform_3(%arg0: i32) -> (i32, i32) {
    %c0_i32 = arith.constant 0 : i32
    %c0_i32_0 = arith.constant 0 : i32
    return %arg0, %c0_i32 : i32, i32
  }
}

</mosaic_0001>

<bundles_post_ra>
// kernel: tpu_custom_call.1
= control target key start
LH: loop header
LB: loop body
LE: loop exit
PB: predicated region body
PF: predicated region fallthrough
CT: control target
= control target key end

     0   :  { %8 = vsyncpa [#allocation3], 0  ;;  %s883_s0 = inlined_call_operand.hbm [shape: f32[8,784], index: 0, kind: input, shape index: {}]   ;;  %s884_s1 = inlined_call_operand.hbm [shape: f32[784,20], index: 1, kind: input, shape index: {}]   ;;  %s885_s2 = inlined_call_operand.hbm [shape: f32[1,20], index: 2, kind: input, shape index: {}]   ;;  %s886_s3 = inlined_call_operand.hbm [shape: f32[8,20], index: 3, kind: output, shape index: {}]  }
   0x1   :  { %9 = vsyncpa [#allocation6], 0 }
   0x2   :  { %10 = vsyncpa [#allocation4], 0  ;;  %s803_s12 = smov [#allocation5]   ;;  %s709_s16 = scalar_lea.hbm %s884_s1, 12544 }
   0x3   :  { %s26_s13 = sshll.u32 %s803_s12, 4  ;;  %p710_p0 = scmp.ne.s32.totalorder %s884_s1, %s709_s16  ;;  %s27_s13 = int_to_ptr.vmem [resolvable:$true] %s26_s13 }
   0x4   :  { %p713_p1 = scmp.lt.u32.totalorder %s709_s16, %s884_s1 }
   0x6   :  { %p715_p2 = pnand %p713_p1, %p710_p0 }
   0x8   :  { %718 = shalt.err (!%p715_p2)
}
   0x9   :  { %s719_s21 = scalar_lea.vmem %s27_s13, 12544  ;;  %p724_p4 = scmp.lt.s32.totalorder %s27_s13, %s27_s13 }
   0xa   :  { %p720_p3 = scmp.ne.s32.totalorder %s27_s13, %s719_s21  ;;  %p725_p5 = scmp.lt.s32.totalorder %s719_s21, %s719_s21 }
   0xc   :  { %p726_p6 = por %p725_p5, %p724_p4 }
   0xe   :  { %p727_p7 = pnand %p726_p6, %p720_p3 }
  0x10   :  { %730 = shalt.err (!%p727_p7)
}
  0x11   :  { %s804_s22 = smov 128   ;;  %s805_s23 = smov 8  }
  0x12   :  { %32 = dma.hbm_to_vmem [thread:$0]  %s884_s1, 12544, %s27_s13, [#allocation6], %s804_s22, %s804_s22, %s805_s23  }
  0x13   :  { %s806_s26 = smov [#allocation2]   ;;  %s807_s28 = smov [#allocation7]  }
  0x14   :  { %s17_s27 = sshll.u32 %s806_s26, 4  ;;  %s39_s29 = sshll.u32 %s807_s28, 4  ;;  %s18_s27 = int_to_ptr.vmem [resolvable:$true] %s17_s27  ;;  %s40_s29 = int_to_ptr.vmem [resolvable:$true] %s39_s29 }
  0x15   :  { %s731_s5 = scalar_lea.hbm %s883_s0, 896 }
  0x16   :  { %p732_p8 = scmp.ne.s32.totalorder %s883_s0, %s731_s5  ;;  %p735_p9 = scmp.lt.u32.totalorder %s731_s5, %s883_s0 }
  0x18   :  { %p737_p10 = pnand %p735_p9, %p732_p8 }
  0x1a   :  { %740 = shalt.err (!%p737_p10)
}
  0x1b   :  { %s741_s1 = scalar_lea.vmem %s18_s27, 896  ;;  %p746_p12 = scmp.lt.s32.totalorder %s18_s27, %s18_s27 }
  0x1c   :  { %p742_p11 = scmp.ne.s32.totalorder %s18_s27, %s741_s1  ;;  %p747_p13 = scmp.lt.s32.totalorder %s741_s1, %s741_s1 }
  0x1e   :  { %p748_p0 = por %p747_p13, %p746_p12 }
  0x20   :  { %p749_p1 = pnand %p748_p0, %p742_p11 }
  0x22   :  { %752 = shalt.err (!%p749_p1)
}
  0x23   :  { %20 = dma.hbm_to_vmem [thread:$0]  %s883_s0, 896, %s18_s27, [#allocation3]  }
  0x24   :  { %s753_s14 = scalar_lea.hbm %s885_s2, 16 }
  0x25   :  { %p754_p2 = scmp.ne.s32.totalorder %s885_s2, %s753_s14  ;;  %p757_p3 = scmp.lt.u32.totalorder %s753_s14, %s885_s2 }
  0x27   :  { %p759_p4 = pnand %p757_p3, %p754_p2 }
  0x29   :  { %762 = shalt.err (!%p759_p4)
}
  0x2a   :  { %s763_s19 = scalar_lea.vmem %s40_s29, 16  ;;  %s767_s20 = scalar_lea.vmem %s40_s29, 32 }
  0x2b   :  { %p764_p5 = scmp.ne.s32.totalorder %s40_s29, %s763_s19  ;;  %p768_p6 = scmp.lt.s32.totalorder %s40_s29, %s40_s29 }
  0x2c   :  { %p769_p7 = scmp.lt.s32.totalorder %s767_s20, %s763_s19 }
  0x2e   :  { %p770_p8 = por %p769_p7, %p768_p6 }
  0x30   :  { %p771_p9 = pnand %p770_p8, %p764_p5 }
  0x32   :  { %774 = shalt.err (!%p771_p9)
}
  0x33   :  { %42 = dma.hbm_to_vmem [thread:$0]  %s885_s2, 16, %s40_s29, [#allocation6]  }
  0x34   :  { %797 = dma.done.wait [#allocation3], 896  }
  0x35   :  { %798 = vsyncadd [#allocation3], 4294966400 }
  0x36   :  { %799 = dma.done.wait [#allocation6], 12560  }
  0x37   :  { %800 = vsyncadd [#allocation6], 4294954736  ;;  %v75_v0 = vld [vmem:[#allocation5 + $0x80] sm:$0xff]  ;;  %v76_v1 = vld [vmem:[#allocation5 + $0x88] sm:$0xff]  ;;  %vm809_vm0 = vmmov 0   ;;  %vm164_vm1 = vcmask 130048  }
  0x38   :  { %v59_v2 = vld [vmem:[#allocation5] sm:$0xff]  ;;  %v597_v3 = vpack.c.bf16 %v76_v1, %v75_v0  ;;  %v60_v4 = vld [vmem:[#allocation5 + $0x8] sm:$0xff]  ;;  %v77_v11 = vld [vmem:[#allocation5 + $0x90] sm:$0xff]  ;;  %vm449_vm2 = vcmask 162816   ;;  %s811_s2 = smov [#allocation8]  }
  0x39   :  { %v107_v5 = vld [vmem:[#allocation5 + $0x180] sm:$0xff]  ;;  %v108_v6 = vld [vmem:[#allocation5 + $0x188] sm:$0xff]  ;;  %v599_v7 = vpack.c.bf16 %v60_v4, %v59_v2  ;;  %v78_v13 = vld [vmem:[#allocation5 + $0x98] sm:$0xff]  ;;  %s470_s22 = sshll.u32 %s811_s2, 4  ;;  %s471_s22 = int_to_ptr.vmem [resolvable:$true] %s470_s22 }
  0x3a   :  { %v629_v8 = vpack.c.bf16 %v108_v6, %v107_v5  ;;  %v91_v9 = vld [vmem:[#allocation5 + $0x100] sm:$0xff]  ;;  %v92_v10 = vld [vmem:[#allocation5 + $0x108] sm:$0xff]  ;;  %598 = vmatprep.subr.bf16.mxu0 %v597_v3  ;;  %v61_v14 = vld [vmem:[#allocation5 + $0x10] sm:$0xff]  ;;  %v601_v16 = vpack.c.bf16 %v78_v13, %v77_v11  ;;  %s775_s23 = scalar_lea.vmem %s471_s22, 128  ;;  %p780_p11 = scmp.lt.s32.totalorder %s471_s22, %s471_s22 }
  0x3b   :  { %v631_v12 = vpack.c.bf16 %v92_v10, %v91_v9  ;;  %v62_v15 = vld [vmem:[#allocation5 + $0x18] sm:$0xff]  ;;  %600 = vmatpush3.bf16.msra.mxu0 %v599_v7  ;;  %v109_v18 = vld [vmem:[#allocation5 + $0x190] sm:$0xff]  ;;  %v79_v23 = vld [vmem:[#allocation5 + $0xa0] sm:$0xff]  ;;  %p776_p10 = scmp.ne.s32.totalorder %s471_s22, %s775_s23  ;;  %p781_p12 = scmp.lt.s32.totalorder %s775_s23, %s775_s23 }
  0x3c   :  { %630 = vmatprep.subr.bf16.mxu1 %v629_v8  ;;  %v603_v17 = vpack.c.bf16 %v62_v15, %v61_v14  ;;  %v110_v19 = vld [vmem:[#allocation5 + $0x198] sm:$0xff]  ;;  %v93_v20 = vld [vmem:[#allocation5 + $0x110] sm:$0xff]  ;;  %v80_v24 = vld [vmem:[#allocation5 + $0xa8] sm:$0xff]  ;;  %602 = vmatprep.subr.bf16.mxu0 %v601_v16 }
  0x3d   :  { %632 = vmatpush3.bf16.msra.mxu1 %v631_v12  ;;  %v633_v21 = vpack.c.bf16 %v110_v19, %v109_v18  ;;  %v94_v22 = vld [vmem:[#allocation5 + $0x118] sm:$0xff]  ;;  %v605_v26 = vpack.c.bf16 %v80_v24, %v79_v23  ;;  %v63_v27 = vld [vmem:[#allocation5 + $0x20] sm:$0xff]  ;;  %v64_v28 = vld [vmem:[#allocation5 + $0x28] sm:$0xff]  ;;  %p782_p13 = por %p781_p12, %p780_p11 }
  0x3e   :  { %v635_v25 = vpack.c.bf16 %v94_v22, %v93_v20  ;;  %v111_v29 = vld [vmem:[#allocation5 + $0x1a0] sm:$0xff]  ;;  %v112_v30 = vld [vmem:[#allocation5 + $0x1a8] sm:$0xff]  ;;  %v607_v33 = vpack.c.bf16 %v64_v28, %v63_v27  ;;  %v81_v35 = vld [vmem:[#allocation5 + $0xb0] sm:$0xff] }
  0x3f   :  { %634 = vmatprep.subr.bf16.mxu1 %v633_v21  ;;  %v95_v31 = vld [vmem:[#allocation5 + $0x120] sm:$0xff]  ;;  %v96_v32 = vld [vmem:[#allocation5 + $0x128] sm:$0xff]  ;;  %604 = vmatpush3.bf16.msra.mxu0 %v603_v17  ;;  %v637_v34 = vpack.c.bf16 %v112_v30, %v111_v29  ;;  %v82_v36 = vld [vmem:[#allocation5 + $0xb8] sm:$0xff]  ;;  %p783_p0 = pnand %p782_p13, %p776_p10 }
  0x40   :  { %v65_v37 = vld [vmem:[#allocation5 + $0x30] sm:$0xff]  ;;  %606 = vmatprep.subr.bf16.mxu0 %v605_v26  ;;  %v639_v38 = vpack.c.bf16 %v96_v32, %v95_v31  ;;  %v609_v39 = vpack.c.bf16 %v82_v36, %v81_v35  ;;  %v66_v40 = vld [vmem:[#allocation5 + $0x38] sm:$0xff]  ;;  %v83_v46 = vld [vmem:[#allocation5 + $0xc0] sm:$0xff] }
  0x41   :  { %636 = vmatpush3.bf16.msra.mxu1 %v635_v25  ;;  %v113_v41 = vld [vmem:[#allocation5 + $0x1b0] sm:$0xff]  ;;  %v114_v42 = vld [vmem:[#allocation5 + $0x1b8] sm:$0xff]  ;;  %v84_v47 = vld [vmem:[#allocation5 + $0xc8] sm:$0xff]  ;;  %v611_v48 = vpack.c.bf16 %v66_v40, %v65_v37 }
  0x42   :  { %638 = vmatprep.subr.bf16.mxu1 %v637_v34  ;;  %v641_v43 = vpack.c.bf16 %v114_v42, %v113_v41  ;;  %v97_v44 = vld [vmem:[#allocation5 + $0x130] sm:$0xff]  ;;  %v98_v45 = vld [vmem:[#allocation5 + $0x138] sm:$0xff]  ;;  %v115_v49 = vld [vmem:[#allocation5 + $0x1c0] sm:$0xff]  ;;  %v613_v52 = vpack.c.bf16 %v84_v47, %v83_v46 }
  0x43   :  { %608 = vmatpush3.bf16.msra.mxu0 %v607_v33  ;;  %v116_v50 = vld [vmem:[#allocation5 + $0x1c8] sm:$0xff]  ;;  %v643_v51 = vpack.c.bf16 %v98_v45, %v97_v44  ;;  %v67_v53 = vld [vmem:[#allocation5 + $0x40] sm:$0xff]  ;;  %v85_v58 = vld [vmem:[#allocation5 + $0xd0] sm:$0xff] }
  0x44   :  { %610 = vmatprep.subr.bf16.mxu0 %v609_v39  ;;  %v68_v54 = vld [vmem:[#allocation5 + $0x48] sm:$0xff]  ;;  %v99_v55 = vld [vmem:[#allocation5 + $0x140] sm:$0xff]  ;;  %v645_v56 = vpack.c.bf16 %v116_v50, %v115_v49  ;;  %v86_v59 = vld [vmem:[#allocation5 + $0xd8] sm:$0xff]  ;;  %v808_v50 = vmov 0.0|0.0  }
  0x45   :  { %640 = vmatpush3.bf16.msra.mxu1 %v639_v38  ;;  %v100_v57 = vld [vmem:[#allocation5 + $0x148] sm:$0xff]  ;;  %v117_v60 = vld [vmem:[#allocation5 + $0x1d0] sm:$0xff]  ;;  %v118_v61 = vld [vmem:[#allocation5 + $0x1d8] sm:$0xff]  ;;  %v615_v62 = vpack.c.bf16 %v68_v54, %v67_v53  ;;  %v617_v0 = vpack.c.bf16 %v86_v59, %v85_v58 }
  0x46   :  { %642 = vmatprep.subr.bf16.mxu1 %v641_v43  ;;  %v647_v63 = vpack.c.bf16 %v100_v57, %v99_v55  ;;  %v69_v1 = vld [vmem:[#allocation5 + $0x50] sm:$0xff]  ;;  %v70_v2 = vld [vmem:[#allocation5 + $0x58] sm:$0xff]  ;;  %v649_v4 = vpack.c.bf16 %v118_v61, %v117_v60  ;;  %v87_v6 = vld [vmem:[#allocation5 + $0xe0] sm:$0xff]  ;;  %v810_v60 = vmov 0.0  }
  0x47   :  { %612 = vmatpush3.bf16.msra.mxu0 %v611_v48  ;;  %v101_v3 = vld [vmem:[#allocation5 + $0x150] sm:$0xff]  ;;  %v102_v5 = vld [vmem:[#allocation5 + $0x158] sm:$0xff]  ;;  %v88_v7 = vld [vmem:[#allocation5 + $0xe8] sm:$0xff]  ;;  %v619_v10 = vpack.c.bf16 %v70_v2, %v69_v1 }
  0x48   :  { %614 = vmatprep.subr.bf16.mxu0 %v613_v52  ;;  %v119_v8 = vld [vmem:[#allocation5 + $0x1e0] sm:$0xff]  ;;  %v120_v9 = vld [vmem:[#allocation5 + $0x1e8] sm:$0xff]  ;;  %v53_v12 = vld [vmem:[#allocation2 + $0x8] sm:$0xff]  ;;  %v651_v13 = vpack.c.bf16 %v102_v5, %v101_v3  ;;  %v621_v14 = vpack.c.bf16 %v88_v7, %v87_v6 }
  0x49   :  { %644 = vmatpush3.bf16.msra.mxu1 %v643_v51  ;;  %v71_v11 = vld [vmem:[#allocation5 + $0x60] sm:$0xff]  ;;  %v72_v15 = vld [vmem:[#allocation5 + $0x68] sm:$0xff]  ;;  %v653_v18 = vpack.c.bf16 %v120_v9, %v119_v8  ;;  %v89_v19 = vld [vmem:[#allocation5 + $0xf0] sm:$0xff]  ;;  %232 = vmatprep.mubr.f32.mxu0 %v53_v12 }
  0x4a   :  { %646 = vmatprep.subr.bf16.mxu1 %v645_v56  ;;  %v103_v16 = vld [vmem:[#allocation5 + $0x160] sm:$0xff]  ;;  %v104_v17 = vld [vmem:[#allocation5 + $0x168] sm:$0xff]  ;;  %v90_v20 = vld [vmem:[#allocation5 + $0xf8] sm:$0xff]  ;;  %v623_v24 = vpack.c.bf16 %v72_v15, %v71_v11 }
  0x4b   :  { %616 = vmatpush3.bf16.msra.mxu0 %v615_v62  ;;  %v55_v21 = vld [vmem:[#allocation2 + $0x18] sm:$0xff]  ;;  %v121_v22 = vld [vmem:[#allocation5 + $0x1f0] sm:$0xff]  ;;  %v122_v23 = vld [vmem:[#allocation5 + $0x1f8] sm:$0xff]  ;;  %v655_v25 = vpack.c.bf16 %v104_v17, %v103_v16  ;;  %v625_v26 = vpack.c.bf16 %v90_v20, %v89_v19 }
  0x4c   :  { %618 = vmatprep.subr.bf16.mxu0 %v617_v0  ;;  %302 = vmatprep.mubr.f32.mxu1 %v55_v21  ;;  %v73_v27 = vld [vmem:[#allocation5 + $0x70] sm:$0xff]  ;;  %v74_v28 = vld [vmem:[#allocation5 + $0x78] sm:$0xff]  ;;  %v657_v30 = vpack.c.bf16 %v122_v23, %v121_v22  ;;  %v139_v32 = vld [vmem:[#allocation5 + $0x280] sm:$0xff] }
  0x4d   :  { %648 = vmatpush3.bf16.msra.mxu1 %v647_v63  ;;  %v105_v29 = vld [vmem:[#allocation5 + $0x170] sm:$0xff]  ;;  %v106_v31 = vld [vmem:[#allocation5 + $0x178] sm:$0xff]  ;;  %v140_v33 = vld [vmem:[#allocation5 + $0x288] sm:$0xff]  ;;  %v627_v34 = vpack.c.bf16 %v74_v28, %v73_v27 }
  0x4e   :  { %650 = vmatprep.subr.bf16.mxu1 %v649_v4  ;;  %v659_v35 = vpack.c.bf16 %v106_v31, %v105_v29  ;;  %v661_v36 = vpack.c.bf16 %v140_v33, %v139_v32  ;;  %v123_v37 = vld [vmem:[#allocation5 + $0x200] sm:$0xff]  ;;  %v124_v38 = vld [vmem:[#allocation5 + $0x208] sm:$0xff]  ;;  %v141_v39 = vld [vmem:[#allocation5 + $0x290] sm:$0xff] }
  0x4f   :  { %620 = vmatpush3.bf16.msra.mxu0 %v619_v10  ;;  %v142_v40 = vld [vmem:[#allocation5 + $0x298] sm:$0xff]  ;;  %v52_v41 = vld [vmem:[#allocation2] sm:$0xff]  ;;  %v663_v42 = vpack.c.bf16 %v124_v38, %v123_v37  ;;  %v125_v44 = vld [vmem:[#allocation5 + $0x210] sm:$0xff] }
  0x50   :  { %622 = vmatprep.subr.bf16.mxu0 %v621_v14  ;;  %v54_v43 = vld [vmem:[#allocation2 + $0x10] sm:$0xff]  ;;  %v665_v45 = vpack.c.bf16 %v142_v40, %v141_v39  ;;  %v143_v47 = vld [vmem:[#allocation5 + $0x2a0] sm:$0xff]  ;;  %v144_v48 = vld [vmem:[#allocation5 + $0x2a8] sm:$0xff] }
  0x51   :  { %652 = vmatpush3.bf16.msra.mxu1 %v651_v13  ;;  %v126_v46 = vld [vmem:[#allocation5 + $0x218] sm:$0xff]  ;;  %v57_v49 = vld [vmem:[#allocation2 + $0x28] sm:$0xff]  ;;  %v155_v51 = vld [vmem:[#allocation5 + $0x300] sm:$0xff]  ;;  %v669_v55 = vpack.c.bf16 %v144_v48, %v143_v47 }
  0x52   :  { %654 = vmatprep.subr.bf16.mxu1 %v653_v18  ;;  %v156_v52 = vld [vmem:[#allocation5 + $0x308] sm:$0xff]  ;;  %v667_v54 = vpack.c.bf16 %v126_v46, %v125_v44  ;;  %v127_v56 = vld [vmem:[#allocation5 + $0x220] sm:$0xff]  ;;  %v145_v58 = vld [vmem:[#allocation5 + $0x2b0] sm:$0xff] }
  0x53   :  { %624 = vmatpush3.bf16.msra.mxu0 %v623_v24  ;;  %v694_v53 = vpack.c.bf16 %v156_v52, %v155_v51  ;;  %v128_v57 = vld [vmem:[#allocation5 + $0x228] sm:$0xff]  ;;  %v146_v59 = vld [vmem:[#allocation5 + $0x2b8] sm:$0xff]  ;;  %v129_v0 = vld [vmem:[#allocation5 + $0x230] sm:$0xff] }
  0x54   :  { %626 = vmatprep.subr.bf16.mxu0 %v625_v26  ;;  %v58_v61 = vld [vmem:[#allocation2 + $0x30] sm:$0xff]  ;;  %v671_v62 = vpack.c.bf16 %v128_v57, %v127_v56  ;;  %v673_v63 = vpack.c.bf16 %v146_v59, %v145_v58  ;;  %v147_v2 = vld [vmem:[#allocation5 + $0x2c0] sm:$0xff]  ;;  %v148_v3 = vld [vmem:[#allocation5 + $0x2c8] sm:$0xff] }
  0x55   :  { %656 = vmatpush3.bf16.msra.mxu1 %v655_v25  ;;  %v130_v1 = vld [vmem:[#allocation5 + $0x238] sm:$0xff]  ;;  %v677_v5 = vpack.c.bf16 %v148_v3, %v147_v2  ;;  %v131_v6 = vld [vmem:[#allocation5 + $0x240] sm:$0xff]  ;;  %v132_v7 = vld [vmem:[#allocation5 + $0x248] sm:$0xff] }
  0x56   :  { %658 = vmatprep.subr.bf16.mxu1 %v657_v30  ;;  %v675_v4 = vpack.c.bf16 %v130_v1, %v129_v0  ;;  %v149_v8 = vld [vmem:[#allocation5 + $0x2d0] sm:$0xff]  ;;  %v150_v9 = vld [vmem:[#allocation5 + $0x2d8] sm:$0xff]  ;;  %v679_v10 = vpack.c.bf16 %v132_v7, %v131_v6  ;;  %v151_v14 = vld [vmem:[#allocation5 + $0x2e0] sm:$0xff] }
  0x57   :  { %628 = vmatpush3.bf16.msra.mxu0 %v627_v34  ;;  %v681_v11 = vpack.c.bf16 %v150_v9, %v149_v8  ;;  %v133_v12 = vld [vmem:[#allocation5 + $0x250] sm:$0xff]  ;;  %v134_v13 = vld [vmem:[#allocation5 + $0x258] sm:$0xff]  ;;  %v152_v15 = vld [vmem:[#allocation5 + $0x2e8] sm:$0xff] }
  0x58   :  { %662 = vmatprep.subr.bf16.mxu0 %v661_v36  ;;  %v683_v16 = vpack.c.bf16 %v134_v13, %v133_v12  ;;  %v685_v17 = vpack.c.bf16 %v152_v15, %v151_v14  ;;  %v135_v18 = vld [vmem:[#allocation5 + $0x260] sm:$0xff]  ;;  %v136_v19 = vld [vmem:[#allocation5 + $0x268] sm:$0xff]  ;;  %v153_v20 = vld [vmem:[#allocation5 + $0x2f0] sm:$0xff] }
  0x59   :  { %660 = vmatpush3.bf16.msra.mxu1 %v659_v35  ;;  %v154_v21 = vld [vmem:[#allocation5 + $0x2f8] sm:$0xff]  ;;  %v687_v22 = vpack.c.bf16 %v136_v19, %v135_v18  ;;  %v137_v24 = vld [vmem:[#allocation5 + $0x270] sm:$0xff]  ;;  %v56_v27 = vld [vmem:[#allocation2 + $0x20] sm:$0xff] }
  0x5a   :  { %693 = vmatprep.subr.bf16.mxu1 %v808_v50  ;;  %233 = vmatmul.mubr.f32.vlgmr.msra.gmra.mrb[0].mxu0 %v52_v41  ;;  %v689_v23 = vpack.c.bf16 %v154_v21, %v153_v20  ;;  %v138_v25 = vld [vmem:[#allocation5 + $0x278] sm:$0xff]  ;;  %v480_v29 = vld [vmem:[#allocation7] ss:$0 sm:$0xff] }
  0x5b   :  { %664 = vmatpush3.bf16.msra.mxu0 %v663_v42  ;;  %372 = vmatprep.mubr.f32.mxu0 %v57_v49  ;;  %v691_v26 = vpack.c.bf16 %v138_v25, %v137_v24 }
  0x5c   :  { %303 = vmatmul.mubr.f32.vlgmr.msra.gmra.mrb[0].mxu1 %v54_v43  ;;  %666 = vmatprep.subr.bf16.mxu0 %v665_v45 }
  0x5d   :  { %695 = vmatpush3.bf16.msra.mxu1 %v694_v53  ;;  %594 = vmatprep.mubr.msk.f32.mxu1 %vm809_vm0, %v810_v60 }
  0x5f   :  { %668 = vmatpush3.bf16.msra.mxu0 %v667_v54 }
  0x60   :  { %670 = vmatprep.subr.bf16.mxu0 %v669_v55  ;;  %595 = vmatmul.mubr.msk.f32.vlgmr.msra.gmra.mrb[2].mxu1 %vm164_vm1, %v58_v61 }
  0x63   :  { %672 = vmatpush3.bf16.msra.mxu0 %v671_v62 }
  0x64   :  { %674 = vmatprep.subr.bf16.mxu0 %v673_v63 }
  0x67   :  { %676 = vmatpush3.bf16.msra.mxu0 %v675_v4 }
  0x68   :  { %678 = vmatprep.subr.bf16.mxu0 %v677_v5 }
  0x6b   :  { %680 = vmatpush3.bf16.msra.mxu0 %v679_v10 }
  0x6c   :  { %682 = vmatprep.subr.bf16.mxu0 %v681_v11 }
  0x6f   :  { %684 = vmatpush3.bf16.msra.mxu0 %v683_v16 }
  0x70   :  { %686 = vmatprep.subr.bf16.mxu0 %v685_v17 }
  0x73   :  { %688 = vmatpush3.bf16.msra.mxu0 %v687_v22 }
  0x74   :  { %690 = vmatprep.subr.bf16.mxu0 %v689_v23 }
  0x77   :  { %692 = vmatpush3.bf16.msra.mxu0 %v691_v26 }
  0x7a   :  { %373 = vmatmul.mubr.f32.vlgmr.msra.gmra.mrb[2].mxu0 %v56_v27 }
 0x12d   :  { %v514_v28 = vpop.f32.mrb[0].mxu0 }
 0x12e   :  { %v515_v30 = vpop.f32.mrb[1].mxu0 }
 0x12f   :  { %v549_v31 = vpop.f32.mrb[0].mxu1  ;;  %v516_v32 = vadd.f32 %v515_v30, %v514_v28 }
 0x130   :  { %v550_v33 = vpop.f32.mrb[1].mxu1 }
 0x131   :  { %v551_v34 = vadd.f32 %v550_v33, %v549_v31  ;;  %v235_v35 = vadd.f32 %v516_v32, %v480_v29 }
 0x133   :  { %v305_v36 = vadd.f32 %v551_v34, %v235_v35  ;;  %v444_v37 = vpop.f32.mrb[2].mxu1 }
 0x134   :  { %v596_v38 = vpop.f32.mrb[3].mxu1 }
 0x14d   :  { %v584_v39 = vpop.f32.mrb[2].mxu0 }
 0x14e   :  { %v585_v40 = vpop.f32.mrb[3].mxu0 }
 0x14f   :  { %v586_v41 = vadd.f32 %v585_v40, %v584_v39 }
 0x151   :  { %v375_v42 = vadd.f32 %v586_v41, %v305_v36 }
 0x153   :  { %v445_v43 = vadd.f32 %v444_v37, %v375_v42 }
 0x155   :  { %v448_v44 = vmax.f32 %v445_v43, 0.0 }
 0x157   :  { %v450_v45 = vsel %vm449_vm2, %v448_v44, -inf }
 0x158   :  { %451 = vmax.xlane.f32.xlu0 %v450_v45 }
 0x1e5   :  { %v452_v46 = vpop.xlane.xlu0 %451 }
 0x1e6   :  { %v453_v47 = vsub.f32 %v448_v44, %v452_v46 }
 0x1e8   :  { %v454_v48 = vmul.f32 1.442695, %v453_v47 }
 0x1ea   :  { %705 = vpow2.f32 %v454_v48 }
 0x1f4   :  { %v706_v49 = vpop.eup %705 }
 0x1f5   :  { %v456_v50 = vsel %vm449_vm2, %v706_v49, 0.0 }
 0x1f6   :  { %457 = vadd.xlane.f32.xlu0 %v456_v50 }
 0x283   :  { %v458_v51 = vpop.xlane.xlu0 %457 }
 0x284   :  { %707 = vlog2.f32 %v458_v51 }
 0x28e   :  { %v708_v52 = vpop.eup %707 }
 0x28f   :  { %v460_v53 = vmul.f32 0.6931472, %v708_v52 }
 0x291   :  { %v461_v54 = vadd.f32 %v460_v53, %v452_v46 }
 0x293   :  { %v462_v55 = vsub.f32 %v448_v44, %v461_v54 }
 0x295   :  { %463 = vst.msk [vmem:[#allocation8] sm:$0xff] %vm449_vm2, %v462_v55 }
 0x296   :  { %786 = shalt.err (!%p783_p0)
}
 0x297   :  { %s787_s26 = scalar_lea.hbm %s886_s3, 128 }
 0x298   :  { %p788_p1 = scmp.ne.s32.totalorder %s886_s3, %s787_s26  ;;  %p791_p2 = scmp.lt.u32.totalorder %s787_s26, %s886_s3 }
 0x29a   :  { %p793_p3 = pnand %p791_p2, %p788_p1 }
 0x29c   :  { %796 = shalt.err (!%p793_p3)
}
 0x29d   :  { %473 = dma.vmem_to_hbm [thread:$0]  %s471_s22, 128, %s886_s3, [#allocation4]  }
 0x29e   :  { %801 = dma.done.wait [#allocation4], 128  }
 0x29f   :  { %802 = vsyncadd [#allocation4], 4294967168 }
 0x2a0   :  { %477 = vsyncpa [#allocation3], 1 }
 0x2a1   :  { %478 = vsyncpa [#allocation6], 1 }
 0x2a2   :  { %479 = vsyncpa [#allocation4], 1 }

</bundles_post_ra>
